<compile_context>
chip_gen: v5e
topology: v5e:2x2
jax: 0.10.0
libtpu: 0.0.40
codegen_flags: <defaults>
</compile_context>

<pallas_src>
import functools

import jax
import jax.numpy as jnp
from jax.experimental import pallas as pl
from jax.experimental.pallas import tpu as pltpu


def _round_up(x, m):
    return ((x + m - 1) // m) * m


def _block_diag2(a, b):
    """[[a, 0], [0, b]] — tiny host-side helper for the fused weights."""
    r1, c1 = a.shape
    r2, c2 = b.shape
    out = jnp.zeros((r1 + r2, c1 + c2), a.dtype)
    out = out.at[:r1, :c1].set(a)
    out = out.at[r1:, c1:].set(b)
    return out


def _fused_kernel(x_ref, dt_ref, w1_ref, w2_ref, wt_ref, out_ref):
    """One grid step: tm rows, subject+object fused along the feature axis.

    x_ref : (tm, 2*d_in)        [subject feats | object feats]   bf16
    dt_ref: (tm, 2)             [dt_subject, dt_object]          bf16
    w1_ref: (2*d_in, 2*dim_l)   blockdiag(Wh^T, Wh^T)            bf16
    w2_ref: (2*dim_l, 2*dim_d)  blockdiag(Whh^T, Whh^T)          bf16
    wt_ref: (2, 2*dim_d)        [[w_st, 0], [0, w_ot]]           bf16
    out   : (tm, 2*dim_d)       [subject emb | object emb]       bf16
    """
    h = jax.nn.sigmoid(
        jnp.dot(x_ref[...], w1_ref[...], preferred_element_type=jnp.float32))

    dt = dt_ref[...].astype(jnp.float32)
    wt = wt_ref[...].astype(jnp.float32)
    # (tm,1)*(1,2*dim_d) broadcasts; zero halves of wt keep branches independent.
    time_term = dt[:, 0:1] * wt[0:1, :] + dt[:, 1:2] * wt[1:2, :]

    pre = time_term + jnp.dot(h.astype(w2_ref.dtype), w2_ref[...],
                              preferred_element_type=jnp.float32)
    out_ref[...] = jax.nn.sigmoid(pre).astype(out_ref.dtype)


@functools.partial(jax.jit, static_argnames=("tm", "compute_dtype"))
def rnn_entity_embedding(subject_input, object_input,
                         subject_delta_time, object_delta_time,
                         wh_t, whh_t, w_st, w_ot,
                         *, tm=2048, compute_dtype=jnp.bfloat16):
    """Pallas equivalent of RNNEntityEmbeddingLayer.forward.

    subject_input / object_input : (B, S, 2*dim_d + dim_c)
    subject_delta_time / object_delta_time : (B, S)
    Weights are pre-transposed relative to torch's (out, in) convention.
    Returns (subject_emb, object_emb), each (B, S, dim_d) in `compute_dtype`.
    """
    B, S, d_in = subject_input.shape
    dim_l = wh_t.shape[1]
    dim_d = whh_t.shape[1]
    M = B * S
    D1, L1, D2 = 2 * d_in, 2 * dim_l, 2 * dim_d

    # Fused (block-diagonal) weights — a few KB, built once per call.
    w1 = _block_diag2(wh_t.astype(compute_dtype), wh_t.astype(compute_dtype))
    w2 = _block_diag2(whh_t.astype(compute_dtype), whh_t.astype(compute_dtype))
    wt = _block_diag2(w_st.astype(compute_dtype), w_ot.astype(compute_dtype))

    # Feature-stacked activations.  In a real model the producer would already
    # emit this layout/dtype; here the cast+concat+reshape fuse into one XLA pass.
    x = jnp.concatenate([subject_input, object_input], axis=-1)
    x = x.reshape(M, D1).astype(compute_dtype)
    dt = jnp.stack([subject_delta_time, object_delta_time], axis=-1)
    dt = dt.reshape(M, 2).astype(compute_dtype)

    # Row tiling: shrink the tile for tiny inputs, pad rows to a tile multiple.
    tm_eff = min(tm, _round_up(M, 8))
    M_pad = _round_up(M, tm_eff)
    if M_pad > M:
        x = jnp.pad(x, ((0, M_pad - M), (0, 0)))
        dt = jnp.pad(dt, ((0, M_pad - M), (0, 0)))

    row_spec = lambda shape: pl.BlockSpec(shape, lambda i: (i, 0))
    full_spec = lambda shape: pl.BlockSpec(shape, lambda i: (0, 0))

    itemsize = jnp.dtype(compute_dtype).itemsize
    cost = pl.CostEstimate(
        flops=2 * M_pad * (D1 * L1 + L1 * D2 + 2 * D2),
        transcendentals=M_pad * (L1 + D2),
        bytes_accessed=itemsize * (M_pad * (D1 + 2 + D2)
                                   + D1 * L1 + L1 * D2 + 2 * D2),
    )

    out = pl.pallas_call(
        _fused_kernel,
        out_shape=jax.ShapeDtypeStruct((M_pad, D2), compute_dtype),
        grid=(M_pad // tm_eff,),
        in_specs=[
            row_spec((tm_eff, D1)),   # fused activation tile
            row_spec((tm_eff, 2)),    # fused delta-time tile
            full_spec((D1, L1)),      # blockdiag(Wh^T, Wh^T)   (resident)
            full_spec((L1, D2)),      # blockdiag(Whh^T, Whh^T) (resident)
            full_spec((2, D2)),       # time weights            (resident)
        ],
        out_specs=row_spec((tm_eff, D2)),
        compiler_params=pltpu.CompilerParams(
            dimension_semantics=("parallel",)),
        cost_estimate=cost,
    )(x, dt, w1, w2, wt)

    out = out[:M].reshape(B, S, D2)
    return out[..., :dim_d], out[..., dim_d:]


def init_params(key, dim_c, dim_l, dim_d):
    """Deterministic parameter init mimicking torch.nn.Linear (uniform ±1/sqrt(fan_in))."""
    d_in = 2 * dim_d + dim_c
    k1, k2, k3, k4 = jax.random.split(key, 4)

    def unif(k, shape, fan_in):
        bound = 1.0 / jnp.sqrt(jnp.float32(fan_in))
        return jax.random.uniform(k, shape, jnp.float32, -bound, bound)

    # Stored already transposed relative to torch's (out, in) convention.
    wh_t = unif(k1, (d_in, dim_l), d_in)     # emb_hidden_layer.weight.T
    whh_t = unif(k2, (dim_l, dim_d), dim_l)  # emb_hh_layer.weight.T
    w_st = unif(k3, (1, dim_d), 1)           # subject_emb_time_layer.weight.T
    w_ot = unif(k4, (1, dim_d), 1)           # object_emb_time_layer.weight.T
    return wh_t, whh_t, w_st, w_ot


def reference_forward(xs, xo, dts, dto, wh_t, whh_t, w_st, w_ot):
    """Pure-JAX f32 reference matching the PyTorch forward exactly."""
    sig = jax.nn.sigmoid
    s_h = sig(jnp.einsum("bsd,dl->bsl", xs, wh_t))
    s_emb = sig(dts[..., None] * w_st[0] + jnp.einsum("bsl,ld->bsd", s_h, whh_t))
    o_h = sig(jnp.einsum("bsd,dl->bsl", xo, wh_t))
    o_emb = sig(dto[..., None] * w_ot[0] + jnp.einsum("bsl,ld->bsd", o_h, whh_t))
    return s_emb, o_emb


if __name__ == "__main__":
    dim_c, dim_l, dim_d = 8, 32, 16
    B, S = 2, 8
    d_in = 2 * dim_d + dim_c

    key = jax.random.PRNGKey(0)
    kp, k1, k2, k3, k4 = jax.random.split(key, 5)
    wh_t, whh_t, w_st, w_ot = init_params(kp, dim_c, dim_l, dim_d)

    subject_input = jax.random.normal(k1, (B, S, d_in), jnp.float32)
    object_input = jax.random.normal(k2, (B, S, d_in), jnp.float32)
    subject_dt = jax.random.uniform(k3, (B, S), jnp.float32)
    object_dt = jax.random.uniform(k4, (B, S), jnp.float32)

    s_emb, o_emb = rnn_entity_embedding(
        subject_input, object_input, subject_dt, object_dt,
        wh_t, whh_t, w_st, w_ot)
    jax.block_until_ready((s_emb, o_emb))

    s_ref, o_ref = reference_forward(
        subject_input, object_input, subject_dt, object_dt,
        wh_t, whh_t, w_st, w_ot)

    assert s_emb.shape == (B, S, dim_d) and o_emb.shape == (B, S, dim_d)
    # bf16 kernel I/O -> relaxed tolerance vs. the f32 reference.
    assert jnp.allclose(s_emb.astype(jnp.float32), s_ref, atol=2e-2, rtol=2e-2)
    assert jnp.allclose(o_emb.astype(jnp.float32), o_ref, atol=2e-2, rtol=2e-2)
    print("KERNEL_OK")
</pallas_src>

<mosaic_0001>
module attributes {stable_mosaic.version = 11 : i64} {
  func.func @_fused_kernel(%arg0: i32, %arg1: memref<16x80xbf16, #tpu.memory_space<vmem>>, %arg2: memref<16x2xbf16, #tpu.memory_space<vmem>>, %arg3: memref<80x64xbf16, #tpu.memory_space<vmem>>, %arg4: memref<64x32xbf16, #tpu.memory_space<vmem>>, %arg5: memref<2x32xbf16, #tpu.memory_space<vmem>>, %arg6: memref<16x32xbf16, #tpu.memory_space<vmem>>) attributes {dimension_semantics = [#tpu.dimension_semantics<parallel>], iteration_bounds = array<i64: 1>, scalar_prefetch = 0 : i64, scratch_operands = 0 : i64, tpu.core_type = #tpu.core_type<tc>, window_params = [{transform_indices = @transform_0, window_bounds = array<i64: 16, 80>}, {transform_indices = @transform_1, window_bounds = array<i64: 16, 2>}, {pipeline_mode = #tpu.pipeline_mode<synchronous>, transform_indices = @transform_2, window_bounds = array<i64: 80, 64>}, {pipeline_mode = #tpu.pipeline_mode<synchronous>, transform_indices = @transform_3, window_bounds = array<i64: 64, 32>}, {pipeline_mode = #tpu.pipeline_mode<synchronous>, transform_indices = @transform_4, window_bounds = array<i64: 2, 32>}, {transform_indices = @transform_5, window_bounds = array<i64: 16, 32>}]} {
    %c0 = arith.constant 0 : index
    %c0_0 = arith.constant 0 : index
    %0 = vector.load %arg1[%c0, %c0_0] : memref<16x80xbf16, #tpu.memory_space<vmem>>, vector<16x80xbf16>
    %c0_1 = arith.constant 0 : index
    %c0_2 = arith.constant 0 : index
    %1 = vector.load %arg3[%c0_1, %c0_2] : memref<80x64xbf16, #tpu.memory_space<vmem>>, vector<80x64xbf16>
    %cst = arith.constant dense<0.000000e+00> : vector<16x64xf32>
    %2 = tpu.matmul %0, %1, %cst {dimension_numbers = #tpu.dot_dimension_numbers<[1], [0], [0], [1], [0, 0, 1, 1], [], []>} : vector<16x80xbf16>, vector<80x64xbf16>, vector<16x64xf32> -> vector<16x64xf32>
    %3 = arith.negf %2 : vector<16x64xf32>
    %4 = math.exp %3 : vector<16x64xf32>
    %cst_3 = arith.constant 1.000000e+00 : f32
    %5 = vector.broadcast %cst_3 : f32 to vector<16x64xf32>
    %6 = arith.addf %5, %4 : vector<16x64xf32>
    %7 = arith.divf %5, %6 : vector<16x64xf32>
    %c0_4 = arith.constant 0 : index
    %c0_5 = arith.constant 0 : index
    %8 = vector.load %arg2[%c0_4, %c0_5] : memref<16x2xbf16, #tpu.memory_space<vmem>>, vector<16x2xbf16>
    %9 = arith.extf %8 : vector<16x2xbf16> to vector<16x2xf32>
    %c0_6 = arith.constant 0 : index
    %c0_7 = arith.constant 0 : index
    %10 = vector.load %arg5[%c0_6, %c0_7] : memref<2x32xbf16, #tpu.memory_space<vmem>>, vector<2x32xbf16>
    %11 = arith.extf %10 : vector<2x32xbf16> to vector<2x32xf32>
    %12 = vector.extract_strided_slice %9 {offsets = [0, 0], sizes = [16, 1], strides = [1, 1]} : vector<16x2xf32> to vector<16x1xf32>
    %13 = vector.extract_strided_slice %11 {offsets = [0, 0], sizes = [1, 32], strides = [1, 1]} : vector<2x32xf32> to vector<1x32xf32>
    %14 = vector.broadcast %12 : vector<16x1xf32> to vector<16x32xf32>
    %15 = vector.broadcast %13 : vector<1x32xf32> to vector<16x32xf32>
    %16 = arith.mulf %14, %15 : vector<16x32xf32>
    %17 = vector.extract_strided_slice %9 {offsets = [0, 1], sizes = [16, 1], strides = [1, 1]} : vector<16x2xf32> to vector<16x1xf32>
    %18 = vector.extract_strided_slice %11 {offsets = [1, 0], sizes = [1, 32], strides = [1, 1]} : vector<2x32xf32> to vector<1x32xf32>
    %19 = vector.broadcast %17 : vector<16x1xf32> to vector<16x32xf32>
    %20 = vector.broadcast %18 : vector<1x32xf32> to vector<16x32xf32>
    %21 = arith.mulf %19, %20 : vector<16x32xf32>
    %22 = arith.addf %16, %21 : vector<16x32xf32>
    %23 = arith.truncf %7 : vector<16x64xf32> to vector<16x64xbf16>
    %c0_8 = arith.constant 0 : index
    %c0_9 = arith.constant 0 : index
    %24 = vector.load %arg4[%c0_8, %c0_9] : memref<64x32xbf16, #tpu.memory_space<vmem>>, vector<64x32xbf16>
    %cst_10 = arith.constant dense<0.000000e+00> : vector<16x32xf32>
    %25 = tpu.matmul %23, %24, %cst_10 {dimension_numbers = #tpu.dot_dimension_numbers<[1], [0], [0], [1], [0, 0, 1, 1], [], []>} : vector<16x64xbf16>, vector<64x32xbf16>, vector<16x32xf32> -> vector<16x32xf32>
    %26 = arith.addf %22, %25 : vector<16x32xf32>
    %27 = arith.negf %26 : vector<16x32xf32>
    %28 = math.exp %27 : vector<16x32xf32>
    %cst_11 = arith.constant 1.000000e+00 : f32
    %29 = vector.broadcast %cst_11 : f32 to vector<16x32xf32>
    %30 = arith.addf %29, %28 : vector<16x32xf32>
    %31 = arith.divf %29, %30 : vector<16x32xf32>
    %32 = arith.truncf %31 : vector<16x32xf32> to vector<16x32xbf16>
    %c0_12 = arith.constant 0 : index
    %c0_13 = arith.constant 0 : index
    %33 = vector.load %arg6[%c0_12, %c0_13] : memref<16x32xbf16, #tpu.memory_space<vmem>>, vector<16x32xbf16>
    tpu.vector_store %arg6[%c0_12, %c0_13], %32 {strides = array<i32>} : memref<16x32xbf16, #tpu.memory_space<vmem>>, vector<16x32xbf16>,
    return
  }
  func.func @transform_0(%arg0: i32) -> (i32, i32) {
    %c0_i32 = arith.constant 0 : i32
    %c0_i32_0 = arith.constant 0 : i32
    return %arg0, %c0_i32 : i32, i32
  }
  func.func @transform_1(%arg0: i32) -> (i32, i32) {
    %c0_i32 = arith.constant 0 : i32
    %c0_i32_0 = arith.constant 0 : i32
    return %arg0, %c0_i32 : i32, i32
  }
  func.func @transform_2(%arg0: i32) -> (i32, i32) {
    %c0_i32 = arith.constant 0 : i32
    %c0_i32_0 = arith.constant 0 : i32
    %c0_i32_1 = arith.constant 0 : i32
    return %c0_i32, %c0_i32_0 : i32, i32
  }
  func.func @transform_3(%arg0: i32) -> (i32, i32) {
    %c0_i32 = arith.constant 0 : i32
    %c0_i32_0 = arith.constant 0 : i32
    %c0_i32_1 = arith.constant 0 : i32
    return %c0_i32, %c0_i32_0 : i32, i32
  }
  func.func @transform_4(%arg0: i32) -> (i32, i32) {
    %c0_i32 = arith.constant 0 : i32
    %c0_i32_0 = arith.constant 0 : i32
    %c0_i32_1 = arith.constant 0 : i32
    return %c0_i32, %c0_i32_0 : i32, i32
  }
  func.func @transform_5(%arg0: i32) -> (i32, i32) {
    %c0_i32 = arith.constant 0 : i32
    %c0_i32_0 = arith.constant 0 : i32
    return %arg0, %c0_i32 : i32, i32
  }
}

</mosaic_0001>

<bundles_post_ra>
// kernel: rnn_entity_embedding.1
= control target key start
LH: loop header
LB: loop body
LE: loop exit
PB: predicated region body
PF: predicated region fallthrough
CT: control target
= control target key end

     0   :  { %vm68_vm0 = vcmask 654336   ;;  %v346_v10 = vmov 0   ;;  %v347_v21 = vmov 1   ;;  %vm189_vm9 = vcmask 523264   ;;  %s422_s2 = inlined_call_operand.vmem [shape: bf16[80,64], index: 2, kind: input, shape index: {}]   ;;  %s423_s0 = inlined_call_operand.vmem [shape: bf16[16,80], index: 0, kind: input, shape index: {}]   ;;  %s424_s3 = inlined_call_operand.vmem [shape: bf16[64,32], index: 3, kind: input, shape index: {}]   ;;  %s425_s1 = inlined_call_operand.vmem [shape: bf16[16,2], index: 1, kind: input, shape index: {}]   ;;  %s426_s4 = inlined_call_operand.vmem [shape: bf16[2,32], index: 4, kind: input, shape index: {}]   ;;  %s427_s5 = inlined_call_operand.vmem [shape: bf16[16,32], index: 5, kind: output, shape index: {}]  }
   0x1   :  { %v307_v0 = vld [vmem:[%s422_s2 + $0x20] sm:$0xff]  ;;  %v306_v1 = vld [vmem:[%s422_s2 + $0x18] sm:$0xff]  ;;  %v305_v2 = vld [vmem:[%s422_s2 + $0x10] sm:$0xff]  ;;  %318 = vset.pattern.permute.xlu0 %v346_v10  ;;  %vm249_vm14 = vcmask 257024  }
   0x2   :  { %75 = vmatpush.bf16.msra.mxu0 %v307_v0  ;;  %v304_v3 = vld [vmem:[%s422_s2 + $0x8] sm:$0xff]  ;;  %v303_v4 = vld [vmem:[%s422_s2] sm:$0xff]  ;;  %v311_v6 = vld [vmem:[%s424_s3 + $0x18] sm:$0xff] }
   0x3   :  { %v302_v5 = vld [vmem:[%s423_s0] sm:$0xff]  ;;  %197 = vmatpush.bf16.msra.mxu1 %v311_v6  ;;  %v310_v7 = vld [vmem:[%s424_s3 + $0x10] sm:$0xff]  ;;  %v309_v8 = vld [vmem:[%s424_s3 + $0x8] sm:$0xff] }
   0x4   :  { %v313_v9 = vld [vmem:[%s425_s1] sm:$0xff]  }
   0x5   :  { %v314_v11 = vunpack.c.l.bf16 %v313_v9  ;;  %v315_v12 = vunpack.c.h.bf16 %v313_v9  ;;  %v308_v15 = vld [vmem:[%s424_s3] sm:$0xff] }
   0x6   :  { %76 = vmatpush.bf16.msra.mxu0 %v306_v1  ;;  %v128_v46 = vld [vmem:[%s426_s4] sm:$0x1] }
   0x7   :  { %198 = vmatpush.bf16.msra.mxu1 %v310_v7  ;;  %v319_v14 = vpack.i.bf16 %v315_v12, %v314_v11  ;;  %v129_v47 = vunpack.c.l.bf16 %v128_v46 }
   0x9   :  { %320 = vperm.xlu0 %318, %v319_v14   ;;  %v140_v49 = vperm.slane %v129_v47, 0  ;;  %v151_v51 = vperm.slane %v129_v47, 1 }
   0xa   :  { %77 = vmatpush.bf16.msra.mxu0 %v305_v2 }
   0xb   :  { %199 = vmatpush.bf16.msra.mxu1 %v309_v8 }
   0xe   :  { %78 = vmatpush.bf16.msra.mxu0 %v304_v3 }
   0xf   :  { %200 = vmatpush.bf16.msra.mxu1 %v308_v15 }
  0x11   :  { %324 = vset.pattern.permute.xlu0 %v347_v21 }
  0x12   :  { %79 = vmatpush.bf16.msra.mxu0 %v303_v4  ;;  %326 = vperm.xlu0 %324, %v319_v14  }
  0x15   :  { %280 = vmatmul.msk.bf16.vlgmr.msra.gmra.mxu0 %vm68_vm0, %v302_v5 }
  0x7b   :  { %v321_v45 = vpop.permute.xlu0 %320 }
  0x7c   :  { %v322_v50 = vunpack.i.l.bf16 %v321_v45  ;;  %v323_v56 = vunpack.i.h.bf16 %v321_v45 }
  0x7e   :  { %v141_v53 = vmul.f32 %v322_v50, %v140_v49  ;;  %v142_v60 = vmul.f32 %v323_v56, %v140_v49 }
  0x84   :  { %v327_v48 = vpop.permute.xlu0 %326 }
  0x85   :  { %v328_v52 = vunpack.i.l.bf16 %v327_v48  ;;  %v329_v57 = vunpack.i.h.bf16 %v327_v48 }
  0x87   :  { %v152_v54 = vmul.f32 %v328_v52, %v151_v51  ;;  %v153_v61 = vmul.f32 %v329_v57, %v151_v51 }
  0x89   :  { %v154_v55 = vadd.f32 %v152_v54, %v141_v53  ;;  %v155_v63 = vadd.f32 %v153_v61, %v142_v60 }
  0x92   :  { %v81_v13 = vpop.f32.mrf.mxu0 }
  0x93   :  { %v281_v16 = vmul.f32 -1.442695, %v81_v13 }
  0x95   :  { %330 = vpow2.f32 %v281_v16 }
  0x9a   :  { %v83_v17 = vpop.f32.mrf.mxu0 }
  0x9b   :  { %v331_v18 = vpop.eup %330  ;;  %v282_v19 = vmul.f32 -1.442695, %v83_v17 }
  0x9c   :  { %v92_v20 = vadd.f32 1.0, %v331_v18 }
  0x9d   :  { %332 = vpow2.f32 %v282_v19 }
  0x9e   :  { %334 = vrcp.f32 %v92_v20  ;;  %vm99_vm2 = vweird.f32 %v92_v20  ;;  %v105_v32 = vand.u32 2147483648, %v92_v20  ;;  %v103_v34 = vand.u32 2147483647, %v92_v20 }
  0xa0   :  { %v106_v39 = vor.u32 1.1754944e-38, %v105_v32  ;;  %vm104_vm7 = vcmp.eq.f32.partialorder %v103_v34, 8.507059e+37 }
  0xa3   :  { %v333_v22 = vpop.eup %332 }
  0xa4   :  { %v335_v23 = vpop.eup %334  ;;  %v93_v24 = vadd.f32 1.0, %v333_v22 }
  0xa5   :  { %v95_v25 = vmul.f32 %v335_v23, %v92_v20  ;;  %vm100_vm1 = vweird.f32 %v335_v23 }
  0xa6   :  { %336 = vrcp.f32 %v93_v24  ;;  %v120_v33 = vand.u32 2147483648, %v93_v24  ;;  %v118_v36 = vand.u32 2147483647, %v93_v24  ;;  %vm101_vm4 = vmor %vm99_vm2, %vm100_vm1  ;;  %vm114_vm5 = vweird.f32 %v93_v24 }
  0xa7   :  { %v96_v26 = vsub.f32 1.0, %v95_v25 }
  0xa8   :  { %v121_v40 = vor.u32 1.1754944e-38, %v120_v33  ;;  %vm119_vm8 = vcmp.eq.f32.partialorder %v118_v36, 8.507059e+37 }
  0xa9   :  { %v97_v27 = vmul.f32 %v335_v23, %v96_v26 }
  0xab   :  { %v98_v31 = vadd.f32 %v335_v23, %v97_v27 }
  0xac   :  { %v337_v28 = vpop.eup %336 }
  0xad   :  { %v110_v29 = vmul.f32 %v337_v28, %v93_v24  ;;  %vm115_vm3 = vweird.f32 %v337_v28  ;;  %v102_v37 = vsel %vm101_vm4, %v335_v23, %v98_v31 }
  0xae   :  { %vm116_vm6 = vmor %vm114_vm5, %vm115_vm3  ;;  %v107_v42 = vsel %vm104_vm7, %v106_v39, %v102_v37 }
  0xaf   :  { %v111_v30 = vsub.f32 1.0, %v110_v29 }
  0xb1   :  { %v112_v35 = vmul.f32 %v337_v28, %v111_v30 }
  0xb3   :  { %v113_v38 = vadd.f32 %v337_v28, %v112_v35 }
  0xb5   :  { %v117_v41 = vsel %vm116_vm6, %v337_v28, %v113_v38 }
  0xb6   :  { %v122_v43 = vsel %vm119_vm8, %v121_v40, %v117_v41 }
  0xb7   :  { %v156_v44 = vpack.c.bf16 %v122_v43, %v107_v42 }
  0xb9   :  { %299 = vmatmul.msk.bf16.vlgmr.msra.gmra.mxu1 %vm189_vm9, %v156_v44 }
 0x136   :  { %v202_v58 = vpop.f32.mrf.mxu1 }
 0x137   :  { %v207_v59 = vadd.f32 %v202_v58, %v154_v55 }
 0x139   :  { %v300_v62 = vmul.f32 -1.442695, %v207_v59 }
 0x13b   :  { %338 = vpow2.f32 %v300_v62 }
 0x13e   :  { %v204_v0 = vpop.f32.mrf.mxu1 }
 0x13f   :  { %v208_v1 = vadd.f32 %v204_v0, %v155_v63 }
 0x141   :  { %v339_v2 = vpop.eup %338  ;;  %v301_v3 = vmul.f32 -1.442695, %v208_v1 }
 0x142   :  { %v215_v4 = vadd.f32 1.0, %v339_v2 }
 0x143   :  { %340 = vpow2.f32 %v301_v3 }
 0x144   :  { %342 = vrcp.f32 %v215_v4  ;;  %v228_v10 = vand.u32 2147483648, %v215_v4  ;;  %v226_v12 = vand.u32 2147483647, %v215_v4  ;;  %vm222_vm11 = vweird.f32 %v215_v4 }
 0x146   :  { %v229_v15 = vor.u32 1.1754944e-38, %v228_v10  ;;  %vm227_vm13 = vcmp.eq.f32.partialorder %v226_v12, 8.507059e+37 }
 0x149   :  { %v341_v5 = vpop.eup %340 }
 0x14a   :  { %v343_v6 = vpop.eup %342  ;;  %v216_v7 = vadd.f32 1.0, %v341_v5 }
 0x14b   :  { %v218_v8 = vmul.f32 %v343_v6, %v215_v4  ;;  %vm223_vm10 = vweird.f32 %v343_v6 }
 0x14c   :  { %344 = vrcp.f32 %v216_v7  ;;  %vm224_vm12 = vmor %vm222_vm11, %vm223_vm10  ;;  %v243_v21 = vand.u32 2147483648, %v216_v7  ;;  %v241_v23 = vand.u32 2147483647, %v216_v7  ;;  %vm237_vm0 = vweird.f32 %v216_v7 }
 0x14d   :  { %v219_v9 = vsub.f32 1.0, %v218_v8 }
 0x14e   :  { %v244_v25 = vor.u32 1.1754944e-38, %v243_v21  ;;  %vm242_vm2 = vcmp.eq.f32.partialorder %v241_v23, 8.507059e+37 }
 0x14f   :  { %v220_v11 = vmul.f32 %v343_v6, %v219_v9 }
 0x151   :  { %v221_v13 = vadd.f32 %v343_v6, %v220_v11 }
 0x152   :  { %v345_v14 = vpop.eup %344 }
 0x153   :  { %v225_v16 = vsel %vm224_vm12, %v343_v6, %v221_v13  ;;  %v233_v17 = vmul.f32 %v345_v14, %v216_v7  ;;  %vm238_vm15 = vweird.f32 %v345_v14 }
 0x154   :  { %v230_v18 = vsel %vm227_vm13, %v229_v15, %v225_v16  ;;  %vm239_vm1 = vmor %vm237_vm0, %vm238_vm15 }
 0x155   :  { %v247_v19 = vpack.c.bf16 %v230_v18, %v230_v18  ;;  %v234_v20 = vsub.f32 1.0, %v233_v17 }
 0x157   :  { %250 = vst.msk [vmem:[%s427_s5] sm:$0xf] %vm249_vm14, %v247_v19  ;;  %v235_v22 = vmul.f32 %v345_v14, %v234_v20 }
 0x159   :  { %v236_v24 = vadd.f32 %v345_v14, %v235_v22 }
 0x15b   :  { %v240_v26 = vsel %vm239_vm1, %v345_v14, %v236_v24 }
 0x15c   :  { %v245_v27 = vsel %vm242_vm2, %v244_v25, %v240_v26 }
 0x15d   :  { %v248_v28 = vpack.c.bf16 %v245_v27, %v245_v27 }
 0x15f   :  { %251 = vst.msk [vmem:[%s427_s5 + $0x4] sm:$0xf] %vm249_vm14, %v248_v28 }

</bundles_post_ra>
